<compile_context>
chip_gen: v7x
topology: tpu7x:2x2x1
jax: 0.10.0
libtpu: 0.0.40
codegen_flags: <defaults>
</compile_context>

<pallas_src>
import jax
import jax.numpy as jnp
from jax import lax
from jax.experimental import pallas as pl
from jax.experimental.pallas import tpu as pltpu

EPS = 1e-5     # nn.BatchNorm2d default eps
GUARD = 8      # zero guard rows above/below the padded row stack (sublane aligned)


# ----------------------------- Pallas kernel -------------------------------

def _make_fused_block_kernel(n, h, w, c):
    hp, wp = h + 2, w + 2
    np_rows = n * hp              # padded rows of all images stacked
    wc, wpc = w * c, wp * c       # lane widths: interior output / padded input

    def conv3x3(buf_ref, w_ref):
        # 3 row-shifted (np_rows, Wp*C) views of the zero-guarded scratch.
        # The dx taps and the Cin contraction live in the banded weight slab,
        # so the whole conv is ONE bf16 MXU matmul with f32 accumulation.
        patches = jnp.concatenate(
            [buf_ref[pl.ds(GUARD - 1 + dy, np_rows), :] for dy in range(3)],
            axis=-1)                                         # (np_rows, 3*Wp*C)
        return jnp.dot(patches.astype(jnp.bfloat16), w_ref[...],
                       preferred_element_type=jnp.float32)   # (np_rows, W*C) f32

    def bn_apply(acc, gamma, beta, rmask, r2):
        # Training-mode BN in one pass (f32 throughout):
        #   sums  = rowmask @ [acc, acc^2]      (masks ring rows, /(N*H*W))
        #   red   = sums @ blockdiag(R, R)      (sum over x, broadcast back to lanes)
        both = jnp.concatenate([acc, acc * acc], axis=-1)              # (rows, 2*WC)
        sums = jnp.dot(rmask, both, preferred_element_type=jnp.float32)
        red = jnp.dot(sums, r2, preferred_element_type=jnp.float32)    # (1, 2*WC)
        mean, mean_sq = red[:, :wc], red[:, wc:]
        var = jnp.maximum(mean_sq - mean * mean, 0.0)                  # clamp
        scale = gamma * lax.rsqrt(var + EPS)
        bias = beta - mean * scale
        return acc * scale + bias

    def kernel(x_ref, w1_ref, w2_ref, gb_ref, rmask_ref, r2_ref, o_ref, buf_ref):
        # The staging buffer is tiny now (2*GUARD+np_rows, Wp*C ~ 15 KB), so a
        # single full zero fill is cheaper than the fragmented guard/ring-only
        # masked stores it would take to skip the interior.
        buf_ref[...] = jnp.zeros((2 * GUARD + np_rows, wpc), jnp.float32)

        zpad = jnp.zeros((h, c), jnp.float32)   # left/right spatial padding lanes

        # Stage the unpadded lane-dense input into the interior rows.
        for img in range(n):
            rows = jnp.concatenate(
                [zpad, x_ref[img * h:(img + 1) * h, :], zpad], axis=-1)
            buf_ref[GUARD + img * hp + 1: GUARD + img * hp + 1 + h, :] = rows

        rmask = rmask_ref[...]    # (1, np_rows) interior-row mask / (N*H*W)
        r2 = r2_ref[...]          # (2*WC, 2*WC) channel reduce+broadcast matrix

        # ---- conv1 -> bn1 -> relu ----
        acc1 = conv3x3(buf_ref, w1_ref)
        y1 = jnp.maximum(
            bn_apply(acc1, gb_ref[0:1, :], gb_ref[1:2, :], rmask, r2), 0.0)

        # Restage interior rows of y1 for conv2 (the ring stays zero from the
        # initial fill); y1 never round-trips to HBM.
        for img in range(n):
            rows = jnp.concatenate(
                [zpad, y1[img * hp + 1: img * hp + 1 + h, :], zpad], axis=-1)
            buf_ref[GUARD + img * hp + 1: GUARD + img * hp + 1 + h, :] = rows

        # ---- conv2 -> bn2 -> +identity -> relu ----
        acc2 = conv3x3(buf_ref, w2_ref)
        y2 = bn_apply(acc2, gb_ref[2:3, :], gb_ref[3:4, :], rmask, r2)

        # Residual + relu + writeback on interior rows only (lane-dense store).
        for img in range(n):
            rows = (y2[img * hp + 1: img * hp + 1 + h, :]
                    + x_ref[img * h:(img + 1) * h, :])
            o_ref[img * h:(img + 1) * h, :] = jnp.maximum(rows, 0.0)

    return kernel, np_rows


# ------------------------------- JAX wrapper --------------------------------

def _full_spec(shape):
    ndim = len(shape)
    return pl.BlockSpec(shape, lambda i, _n=ndim: (0,) * _n)


def basic_block_forward_lane_dense(x_ld, params, *, n, h, w, c):
    """Core fused BasicBlock.  x_ld / return: (N*H, W*C) float32, NHWC lane-dense."""
    hp = h + 2
    wc = w * c
    kernel, np_rows = _make_fused_block_kernel(n, h, w, c)

    # Interior-row mask of the padded row stack, pre-scaled by 1/(N*H*W).
    yp = jnp.arange(np_rows, dtype=jnp.int32) % hp
    rmask = jnp.where((yp >= 1) & (yp <= h), 1.0 / float(n * h * w), 0.0)
    rmask = rmask.astype(jnp.float32).reshape(1, np_rows)

    # R[(x,co),(x',co')] = (co == co'): sums over x and broadcasts the
    # per-channel value back to every (x, c) lane.  r2 = blockdiag(R, R).
    R = jnp.tile(jnp.eye(c, dtype=jnp.float32), (w, w))
    r2 = jnp.zeros((2 * wc, 2 * wc), jnp.float32)
    r2 = r2.at[:wc, :wc].set(R).at[wc:, wc:].set(R)

    return pl.pallas_call(
        kernel,
        out_shape=jax.ShapeDtypeStruct((n * h, wc), jnp.float32),
        grid=(1,),
        in_specs=[_full_spec(s) for s in (x_ld.shape, params["w1"].shape,
                                          params["w2"].shape, params["gb"].shape,
                                          rmask.shape, r2.shape)],
        out_specs=_full_spec((n * h, wc)),
        scratch_shapes=[pltpu.VMEM((2 * GUARD + np_rows, (w + 2) * c), jnp.float32)],
        compiler_params=pltpu.CompilerParams(
            dimension_semantics=("arbitrary",)),
    )(x_ld, params["w1"], params["w2"], params["gb"], rmask, r2)


def basic_block_forward(x_nchw, params):
    """NCHW (PyTorch convention) adapter.  In a full network the activation
    stays in the lane-dense (N*H, W*C) layout end-to-end; the transposes here
    exist only at the module / comparison boundary."""
    n, c, h, w = x_nchw.shape
    x_ld = jnp.transpose(x_nchw, (0, 2, 3, 1)).reshape(n * h, w * c)
    x_ld = x_ld.astype(jnp.float32)
    out_ld = basic_block_forward_lane_dense(x_ld, params, n=n, h=h, w=w, c=c)
    return jnp.transpose(out_ld.reshape(n, h, w, c), (0, 3, 1, 2))


# ------------------------------ parameters ----------------------------------

def _to_banded_slab(w_oihw, width):
    """OIHW (Cout,Cin,3,3) -> banded (3*Wp*Cin, W*Cout) bf16 slab:
    B[dy*Wp*Cin + xp*Cin + ci, x*Cout + co] = W[co,ci,dy,xp-x] for xp-x in {0,1,2}."""
    co, ci = int(w_oihw.shape[0]), int(w_oihw.shape[1])
    wp = width + 2
    w_t = jnp.transpose(w_oihw, (2, 3, 1, 0))            # (dy, dx, ci, co)
    slab = jnp.zeros((3, wp, ci, width, co), jnp.float32)
    for dx in range(3):
        for x in range(width):
            slab = slab.at[:, x + dx, :, x, :].set(w_t[:, dx, :, :])
    return slab.reshape(3 * wp * ci, width * co).astype(jnp.bfloat16)


def init_params(key, inplanes, planes, width):
    """Deterministic synthetic parameters (shapes from BasicBlock.__init__)."""
    ks = jax.random.split(key, 6)
    w1 = 0.1 * jax.random.normal(ks[0], (planes, inplanes, 3, 3), jnp.float32)
    w2 = 0.1 * jax.random.normal(ks[1], (planes, planes, 3, 3), jnp.float32)
    g1 = 1.0 + 0.1 * jax.random.normal(ks[2], (planes,), jnp.float32)
    b1 = 0.1 * jax.random.normal(ks[3], (planes,), jnp.float32)
    g2 = 1.0 + 0.1 * jax.random.normal(ks[4], (planes,), jnp.float32)
    b2 = 0.1 * jax.random.normal(ks[5], (planes,), jnp.float32)

    # gamma/beta pre-tiled onto the (x, c) lane layout, packed into one tile.
    gb = jnp.stack([jnp.tile(v, width) for v in (g1, b1, g2, b2)])  # (4, W*C)

    params = {"w1": _to_banded_slab(w1, width),
              "w2": _to_banded_slab(w2, width),
              "gb": gb.astype(jnp.float32)}
    raw = {"w1": w1, "w2": w2, "g1": g1, "b1": b1, "g2": g2, "b2": b2}
    return params, raw


# ----------------------------- pure-JAX reference ---------------------------

def _bn_train_ref(y_nchw, gamma, beta):
    mean = y_nchw.mean(axis=(0, 2, 3), keepdims=True)
    var = jnp.mean(jnp.square(y_nchw - mean), axis=(0, 2, 3), keepdims=True)
    yhat = (y_nchw - mean) / jnp.sqrt(var + EPS)
    return yhat * gamma.reshape(1, -1, 1, 1) + beta.reshape(1, -1, 1, 1)


def reference_forward(x, raw, *, bf16_matmul=False):
    """BasicBlock reference.  With bf16_matmul=True the conv operands are
    rounded to bf16 (f32 accumulation), matching the kernel's MXU numerics."""
    dn = ("NCHW", "OIHW", "NCHW")

    def conv(a, wgt):
        if bf16_matmul:
            a = a.astype(jnp.bfloat16).astype(jnp.float32)
            wgt = wgt.astype(jnp.bfloat16).astype(jnp.float32)
        return lax.conv_general_dilated(a, wgt, (1, 1), ((1, 1), (1, 1)),
                                        dimension_numbers=dn)

    y = conv(x, raw["w1"])
    y = jnp.maximum(_bn_train_ref(y, raw["g1"], raw["b1"]), 0.0)
    y2 = conv(y, raw["w2"])
    y2 = _bn_train_ref(y2, raw["g2"], raw["b2"]) + x
    return jnp.maximum(y2, 0.0)


# ---------------------------------- main ------------------------------------

if __name__ == "__main__":
    key = jax.random.PRNGKey(0)
    kx, kp = jax.random.split(key)

    N, C, H, W = 2, 4, 16, 16          # inplanes = planes = 4, stride = 1
    x = jax.random.normal(kx, (N, C, H, W), jnp.float32)
    params, raw = init_params(kp, inplanes=C, planes=C, width=W)

    out = jax.block_until_ready(basic_block_forward(x, params))
    assert out.shape == (N, C, H, W)

    # Tight check against a reference with matching bf16 MXU operand numerics.
    ref_match = jax.block_until_ready(reference_forward(x, raw, bf16_matmul=True))
    err_m = float(jnp.max(jnp.abs(out - ref_match)))
    assert jnp.allclose(out, ref_match, rtol=5e-3, atol=5e-3), (
        f"matched-precision ref max abs err {err_m}")

    # Looser sanity bound against the pure-f32 module semantics.
    ref_f32 = jax.block_until_ready(reference_forward(x, raw, bf16_matmul=False))
    err_f = float(jnp.max(jnp.abs(out - ref_f32)))
    assert jnp.allclose(out, ref_f32, rtol=1e-1, atol=1e-1), (
        f"f32 ref max abs err {err_f}")

    print("KERNEL_OK")
</pallas_src>

<mosaic_0001>
module attributes {stable_mosaic.version = 11 : i64} {
  func.func @kernel(%arg0: i32, %arg1: memref<32x64xf32, #tpu.memory_space<vmem>>, %arg2: memref<216x64xbf16, #tpu.memory_space<vmem>>, %arg3: memref<216x64xbf16, #tpu.memory_space<vmem>>, %arg4: memref<4x64xf32, #tpu.memory_space<vmem>>, %arg5: memref<1x36xf32, #tpu.memory_space<vmem>>, %arg6: memref<128x128xf32, #tpu.memory_space<vmem>>, %arg7: memref<32x64xf32, #tpu.memory_space<vmem>>, %arg8: memref<52x72xf32, #tpu.memory_space<vmem>>) attributes {dimension_semantics = [#tpu.dimension_semantics<arbitrary>], iteration_bounds = array<i64: 1>, scalar_prefetch = 0 : i64, scratch_operands = 1 : i64, tpu.core_type = #tpu.core_type<tc>, window_params = [{pipeline_mode = #tpu.pipeline_mode<synchronous>, transform_indices = @transform_0, window_bounds = array<i64: 32, 64>}, {pipeline_mode = #tpu.pipeline_mode<synchronous>, transform_indices = @transform_1, window_bounds = array<i64: 216, 64>}, {pipeline_mode = #tpu.pipeline_mode<synchronous>, transform_indices = @transform_2, window_bounds = array<i64: 216, 64>}, {pipeline_mode = #tpu.pipeline_mode<synchronous>, transform_indices = @transform_3, window_bounds = array<i64: 4, 64>}, {pipeline_mode = #tpu.pipeline_mode<synchronous>, transform_indices = @transform_4, window_bounds = array<i64: 1, 36>}, {pipeline_mode = #tpu.pipeline_mode<synchronous>, transform_indices = @transform_5, window_bounds = array<i64: 128, 128>}, {pipeline_mode = #tpu.pipeline_mode<synchronous>, transform_indices = @transform_6, window_bounds = array<i64: 32, 64>}]} {
    %cst = arith.constant 0.000000e+00 : f32
    %0 = vector.broadcast %cst : f32 to vector<52x72xf32>
    %c0 = arith.constant 0 : index
    %c0_0 = arith.constant 0 : index
    %1 = vector.load %arg8[%c0, %c0_0] : memref<52x72xf32, #tpu.memory_space<vmem>>, vector<52x72xf32>
    tpu.vector_store %arg8[%c0, %c0_0], %0 {strides = array<i32>} : memref<52x72xf32, #tpu.memory_space<vmem>>, vector<52x72xf32>,
    %cst_1 = arith.constant 0.000000e+00 : f32
    %2 = vector.broadcast %cst_1 : f32 to vector<16x4xf32>
    %c0_2 = arith.constant 0 : index
    %c0_3 = arith.constant 0 : index
    %3 = vector.load %arg1[%c0_2, %c0_3] : memref<32x64xf32, #tpu.memory_space<vmem>>, vector<16x64xf32>
    %4 = tpu.concatenate %2, %3, %2 in 1 : vector<16x4xf32>, vector<16x64xf32>, vector<16x4xf32> -> vector<16x72xf32>
    %c9 = arith.constant 9 : index
    %c0_4 = arith.constant 0 : index
    %5 = vector.load %arg8[%c9, %c0_4] : memref<52x72xf32, #tpu.memory_space<vmem>>, vector<16x72xf32>
    tpu.vector_store %arg8[%c9, %c0_4], %4 {strides = array<i32>} : memref<52x72xf32, #tpu.memory_space<vmem>>, vector<16x72xf32>,
    %c16 = arith.constant 16 : index
    %c0_5 = arith.constant 0 : index
    %6 = vector.load %arg1[%c16, %c0_5] : memref<32x64xf32, #tpu.memory_space<vmem>>, vector<16x64xf32>
    %7 = tpu.concatenate %2, %6, %2 in 1 : vector<16x4xf32>, vector<16x64xf32>, vector<16x4xf32> -> vector<16x72xf32>
    %c27 = arith.constant 27 : index
    %c0_6 = arith.constant 0 : index
    %8 = vector.load %arg8[%c27, %c0_6] : memref<52x72xf32, #tpu.memory_space<vmem>>, vector<16x72xf32>
    tpu.vector_store %arg8[%c27, %c0_6], %7 {strides = array<i32>} : memref<52x72xf32, #tpu.memory_space<vmem>>, vector<16x72xf32>,
    %c0_7 = arith.constant 0 : index
    %c0_8 = arith.constant 0 : index
    %9 = vector.load %arg5[%c0_7, %c0_8] : memref<1x36xf32, #tpu.memory_space<vmem>>, vector<1x36xf32>
    %c0_9 = arith.constant 0 : index
    %c0_10 = arith.constant 0 : index
    %10 = vector.load %arg6[%c0_9, %c0_10] : memref<128x128xf32, #tpu.memory_space<vmem>>, vector<128x128xf32>
    %c7 = arith.constant 7 : index
    %c0_11 = arith.constant 0 : index
    %11 = vector.load %arg8[%c7, %c0_11] : memref<52x72xf32, #tpu.memory_space<vmem>>, vector<36x72xf32>
    %c8 = arith.constant 8 : index
    %c0_12 = arith.constant 0 : index
    %12 = vector.load %arg8[%c8, %c0_12] : memref<52x72xf32, #tpu.memory_space<vmem>>, vector<36x72xf32>
    %c9_13 = arith.constant 9 : index
    %c0_14 = arith.constant 0 : index
    %13 = vector.load %arg8[%c9_13, %c0_14] : memref<52x72xf32, #tpu.memory_space<vmem>>, vector<36x72xf32>
    %14 = tpu.concatenate %11, %12, %13 in 1 : vector<36x72xf32>, vector<36x72xf32>, vector<36x72xf32> -> vector<36x216xf32>
    %15 = arith.truncf %14 : vector<36x216xf32> to vector<36x216xbf16>
    %c0_15 = arith.constant 0 : index
    %c0_16 = arith.constant 0 : index
    %16 = vector.load %arg2[%c0_15, %c0_16] : memref<216x64xbf16, #tpu.memory_space<vmem>>, vector<216x64xbf16>
    %cst_17 = arith.constant dense<0.000000e+00> : vector<36x64xf32>
    %17 = tpu.matmul %15, %16, %cst_17 {dimension_numbers = #tpu.dot_dimension_numbers<[1], [0], [0], [1], [0, 0, 1, 1], [], []>} : vector<36x216xbf16>, vector<216x64xbf16>, vector<36x64xf32> -> vector<36x64xf32>
    %c0_18 = arith.constant 0 : index
    %c0_19 = arith.constant 0 : index
    %18 = vector.load %arg4[%c0_18, %c0_19] : memref<4x64xf32, #tpu.memory_space<vmem>>, vector<1x64xf32>
    %c1 = arith.constant 1 : index
    %c0_20 = arith.constant 0 : index
    %19 = vector.load %arg4[%c1, %c0_20] : memref<4x64xf32, #tpu.memory_space<vmem>>, vector<1x64xf32>
    %20 = arith.mulf %17, %17 : vector<36x64xf32>
    %21 = tpu.concatenate %17, %20 in 1 : vector<36x64xf32>, vector<36x64xf32> -> vector<36x128xf32>
    %cst_21 = arith.constant dense<0.000000e+00> : vector<1x128xf32>
    %22 = tpu.matmul %9, %21, %cst_21 {dimension_numbers = #tpu.dot_dimension_numbers<[1], [0], [0], [1], [0, 0, 1, 1], [], []>} : vector<1x36xf32>, vector<36x128xf32>, vector<1x128xf32> -> vector<1x128xf32>
    %cst_22 = arith.constant dense<0.000000e+00> : vector<1x128xf32>
    %23 = tpu.matmul %22, %10, %cst_22 {dimension_numbers = #tpu.dot_dimension_numbers<[1], [0], [0], [1], [0, 0, 1, 1], [], []>} : vector<1x128xf32>, vector<128x128xf32>, vector<1x128xf32> -> vector<1x128xf32>
    %24 = vector.extract_strided_slice %23 {offsets = [0, 0], sizes = [1, 64], strides = [1, 1]} : vector<1x128xf32> to vector<1x64xf32>
    %25 = vector.extract_strided_slice %23 {offsets = [0, 64], sizes = [1, 64], strides = [1, 1]} : vector<1x128xf32> to vector<1x64xf32>
    %26 = arith.mulf %24, %24 : vector<1x64xf32>
    %27 = arith.subf %25, %26 : vector<1x64xf32>
    %cst_23 = arith.constant 0.000000e+00 : f32
    %28 = vector.broadcast %cst_23 : f32 to vector<1x64xf32>
    %29 = arith.maximumf %27, %28 : vector<1x64xf32>
    %cst_24 = arith.constant 9.99999974E-6 : f32
    %30 = vector.broadcast %cst_24 : f32 to vector<1x64xf32>
    %31 = arith.addf %29, %30 : vector<1x64xf32>
    %32 = math.rsqrt %31 : vector<1x64xf32>
    %33 = arith.mulf %18, %32 : vector<1x64xf32>
    %34 = arith.mulf %24, %33 : vector<1x64xf32>
    %35 = arith.subf %19, %34 : vector<1x64xf32>
    %36 = vector.broadcast %33 : vector<1x64xf32> to vector<36x64xf32>
    %37 = arith.mulf %17, %36 : vector<36x64xf32>
    %38 = vector.broadcast %35 : vector<1x64xf32> to vector<36x64xf32>
    %39 = arith.addf %37, %38 : vector<36x64xf32>
    %cst_25 = arith.constant 0.000000e+00 : f32
    %40 = vector.broadcast %cst_25 : f32 to vector<36x64xf32>
    %41 = arith.maximumf %39, %40 : vector<36x64xf32>
    %42 = vector.extract_strided_slice %41 {offsets = [1, 0], sizes = [16, 64], strides = [1, 1]} : vector<36x64xf32> to vector<16x64xf32>
    %43 = tpu.concatenate %2, %42, %2 in 1 : vector<16x4xf32>, vector<16x64xf32>, vector<16x4xf32> -> vector<16x72xf32>
    %c9_26 = arith.constant 9 : index
    %c0_27 = arith.constant 0 : index
    %44 = vector.load %arg8[%c9_26, %c0_27] : memref<52x72xf32, #tpu.memory_space<vmem>>, vector<16x72xf32>
    tpu.vector_store %arg8[%c9_26, %c0_27], %43 {strides = array<i32>} : memref<52x72xf32, #tpu.memory_space<vmem>>, vector<16x72xf32>,
    %45 = vector.extract_strided_slice %41 {offsets = [19, 0], sizes = [16, 64], strides = [1, 1]} : vector<36x64xf32> to vector<16x64xf32>
    %46 = tpu.concatenate %2, %45, %2 in 1 : vector<16x4xf32>, vector<16x64xf32>, vector<16x4xf32> -> vector<16x72xf32>
    %c27_28 = arith.constant 27 : index
    %c0_29 = arith.constant 0 : index
    %47 = vector.load %arg8[%c27_28, %c0_29] : memref<52x72xf32, #tpu.memory_space<vmem>>, vector<16x72xf32>
    tpu.vector_store %arg8[%c27_28, %c0_29], %46 {strides = array<i32>} : memref<52x72xf32, #tpu.memory_space<vmem>>, vector<16x72xf32>,
    %c7_30 = arith.constant 7 : index
    %c0_31 = arith.constant 0 : index
    %48 = vector.load %arg8[%c7_30, %c0_31] : memref<52x72xf32, #tpu.memory_space<vmem>>, vector<36x72xf32>
    %c8_32 = arith.constant 8 : index
    %c0_33 = arith.constant 0 : index
    %49 = vector.load %arg8[%c8_32, %c0_33] : memref<52x72xf32, #tpu.memory_space<vmem>>, vector<36x72xf32>
    %c9_34 = arith.constant 9 : index
    %c0_35 = arith.constant 0 : index
    %50 = vector.load %arg8[%c9_34, %c0_35] : memref<52x72xf32, #tpu.memory_space<vmem>>, vector<36x72xf32>
    %51 = tpu.concatenate %48, %49, %50 in 1 : vector<36x72xf32>, vector<36x72xf32>, vector<36x72xf32> -> vector<36x216xf32>
    %52 = arith.truncf %51 : vector<36x216xf32> to vector<36x216xbf16>
    %c0_36 = arith.constant 0 : index
    %c0_37 = arith.constant 0 : index
    %53 = vector.load %arg3[%c0_36, %c0_37] : memref<216x64xbf16, #tpu.memory_space<vmem>>, vector<216x64xbf16>
    %cst_38 = arith.constant dense<0.000000e+00> : vector<36x64xf32>
    %54 = tpu.matmul %52, %53, %cst_38 {dimension_numbers = #tpu.dot_dimension_numbers<[1], [0], [0], [1], [0, 0, 1, 1], [], []>} : vector<36x216xbf16>, vector<216x64xbf16>, vector<36x64xf32> -> vector<36x64xf32>
    %c2 = arith.constant 2 : index
    %c0_39 = arith.constant 0 : index
    %55 = vector.load %arg4[%c2, %c0_39] : memref<4x64xf32, #tpu.memory_space<vmem>>, vector<1x64xf32>
    %c3 = arith.constant 3 : index
    %c0_40 = arith.constant 0 : index
    %56 = vector.load %arg4[%c3, %c0_40] : memref<4x64xf32, #tpu.memory_space<vmem>>, vector<1x64xf32>
    %57 = arith.mulf %54, %54 : vector<36x64xf32>
    %58 = tpu.concatenate %54, %57 in 1 : vector<36x64xf32>, vector<36x64xf32> -> vector<36x128xf32>
    %cst_41 = arith.constant dense<0.000000e+00> : vector<1x128xf32>
    %59 = tpu.matmul %9, %58, %cst_41 {dimension_numbers = #tpu.dot_dimension_numbers<[1], [0], [0], [1], [0, 0, 1, 1], [], []>} : vector<1x36xf32>, vector<36x128xf32>, vector<1x128xf32> -> vector<1x128xf32>
    %cst_42 = arith.constant dense<0.000000e+00> : vector<1x128xf32>
    %60 = tpu.matmul %59, %10, %cst_42 {dimension_numbers = #tpu.dot_dimension_numbers<[1], [0], [0], [1], [0, 0, 1, 1], [], []>} : vector<1x128xf32>, vector<128x128xf32>, vector<1x128xf32> -> vector<1x128xf32>
    %61 = vector.extract_strided_slice %60 {offsets = [0, 0], sizes = [1, 64], strides = [1, 1]} : vector<1x128xf32> to vector<1x64xf32>
    %62 = vector.extract_strided_slice %60 {offsets = [0, 64], sizes = [1, 64], strides = [1, 1]} : vector<1x128xf32> to vector<1x64xf32>
    %63 = arith.mulf %61, %61 : vector<1x64xf32>
    %64 = arith.subf %62, %63 : vector<1x64xf32>
    %cst_43 = arith.constant 0.000000e+00 : f32
    %65 = vector.broadcast %cst_43 : f32 to vector<1x64xf32>
    %66 = arith.maximumf %64, %65 : vector<1x64xf32>
    %cst_44 = arith.constant 9.99999974E-6 : f32
    %67 = vector.broadcast %cst_44 : f32 to vector<1x64xf32>
    %68 = arith.addf %66, %67 : vector<1x64xf32>
    %69 = math.rsqrt %68 : vector<1x64xf32>
    %70 = arith.mulf %55, %69 : vector<1x64xf32>
    %71 = arith.mulf %61, %70 : vector<1x64xf32>
    %72 = arith.subf %56, %71 : vector<1x64xf32>
    %73 = vector.broadcast %70 : vector<1x64xf32> to vector<36x64xf32>
    %74 = arith.mulf %54, %73 : vector<36x64xf32>
    %75 = vector.broadcast %72 : vector<1x64xf32> to vector<36x64xf32>
    %76 = arith.addf %74, %75 : vector<36x64xf32>
    %77 = vector.extract_strided_slice %76 {offsets = [1, 0], sizes = [16, 64], strides = [1, 1]} : vector<36x64xf32> to vector<16x64xf32>
    %c0_45 = arith.constant 0 : index
    %c0_46 = arith.constant 0 : index
    %78 = vector.load %arg1[%c0_45, %c0_46] : memref<32x64xf32, #tpu.memory_space<vmem>>, vector<16x64xf32>
    %79 = arith.addf %77, %78 : vector<16x64xf32>
    %cst_47 = arith.constant 0.000000e+00 : f32
    %80 = vector.broadcast %cst_47 : f32 to vector<16x64xf32>
    %81 = arith.maximumf %79, %80 : vector<16x64xf32>
    %c0_48 = arith.constant 0 : index
    %c0_49 = arith.constant 0 : index
    %82 = vector.load %arg7[%c0_48, %c0_49] : memref<32x64xf32, #tpu.memory_space<vmem>>, vector<16x64xf32>
    tpu.vector_store %arg7[%c0_48, %c0_49], %81 {strides = array<i32>} : memref<32x64xf32, #tpu.memory_space<vmem>>, vector<16x64xf32>,
    %83 = vector.extract_strided_slice %76 {offsets = [19, 0], sizes = [16, 64], strides = [1, 1]} : vector<36x64xf32> to vector<16x64xf32>
    %c16_50 = arith.constant 16 : index
    %c0_51 = arith.constant 0 : index
    %84 = vector.load %arg1[%c16_50, %c0_51] : memref<32x64xf32, #tpu.memory_space<vmem>>, vector<16x64xf32>
    %85 = arith.addf %83, %84 : vector<16x64xf32>
    %cst_52 = arith.constant 0.000000e+00 : f32
    %86 = vector.broadcast %cst_52 : f32 to vector<16x64xf32>
    %87 = arith.maximumf %85, %86 : vector<16x64xf32>
    %c16_53 = arith.constant 16 : index
    %c0_54 = arith.constant 0 : index
    %88 = vector.load %arg7[%c16_53, %c0_54] : memref<32x64xf32, #tpu.memory_space<vmem>>, vector<16x64xf32>
    tpu.vector_store %arg7[%c16_53, %c0_54], %87 {strides = array<i32>} : memref<32x64xf32, #tpu.memory_space<vmem>>, vector<16x64xf32>,
    return
  }
  func.func @transform_0(%arg0: i32) -> (i32, i32) {
    %c0_i32 = arith.constant 0 : i32
    %c0_i32_0 = arith.constant 0 : i32
    %c0_i32_1 = arith.constant 0 : i32
    return %c0_i32, %c0_i32_0 : i32, i32
  }
  func.func @transform_1(%arg0: i32) -> (i32, i32) {
    %c0_i32 = arith.constant 0 : i32
    %c0_i32_0 = arith.constant 0 : i32
    %c0_i32_1 = arith.constant 0 : i32
    return %c0_i32, %c0_i32_0 : i32, i32
  }
  func.func @transform_2(%arg0: i32) -> (i32, i32) {
    %c0_i32 = arith.constant 0 : i32
    %c0_i32_0 = arith.constant 0 : i32
    %c0_i32_1 = arith.constant 0 : i32
    return %c0_i32, %c0_i32_0 : i32, i32
  }
  func.func @transform_3(%arg0: i32) -> (i32, i32) {
    %c0_i32 = arith.constant 0 : i32
    %c0_i32_0 = arith.constant 0 : i32
    %c0_i32_1 = arith.constant 0 : i32
    return %c0_i32, %c0_i32_0 : i32, i32
  }
  func.func @transform_4(%arg0: i32) -> (i32, i32) {
    %c0_i32 = arith.constant 0 : i32
    %c0_i32_0 = arith.constant 0 : i32
    %c0_i32_1 = arith.constant 0 : i32
    return %c0_i32, %c0_i32_0 : i32, i32
  }
  func.func @transform_5(%arg0: i32) -> (i32, i32) {
    %c0_i32 = arith.constant 0 : i32
    %c0_i32_0 = arith.constant 0 : i32
    %c0_i32_1 = arith.constant 0 : i32
    return %c0_i32, %c0_i32_0 : i32, i32
  }
  func.func @transform_6(%arg0: i32) -> (i32, i32) {
    %c0_i32 = arith.constant 0 : i32
    %c0_i32_0 = arith.constant 0 : i32
    %c0_i32_1 = arith.constant 0 : i32
    return %c0_i32, %c0_i32_0 : i32, i32
  }
}

</mosaic_0001>

<bundles_post_ra>
// kernel: tpu_custom_call.1
= control target key start
LH: loop header
LB: loop body
LE: loop exit
PB: predicated region body
PF: predicated region fallthrough
CT: control target
= control target key end

     0   :  { %s1478_s25 = smov 4   ;;  %vm25_vm0 = vcmask 588800   ;;  %v1479_v4 = vmov 0.0   ;;  %v1480_v6 = vmov 0   ;;  %s1979_s0 = inlined_call_operand.vmem [shape: f32[32,64], index: 0, kind: input, shape index: {}]   ;;  %s1980_s1 = inlined_call_operand.vmem [shape: bf16[216,64], index: 1, kind: input, shape index: {}]   ;;  %s1981_s2 = inlined_call_operand.vmem [shape: bf16[216,64], index: 2, kind: input, shape index: {}]   ;;  %s1982_s3 = inlined_call_operand.vmem [shape: f32[4,64], index: 3, kind: input, shape index: {}]   ;;  %s1983_s4 = inlined_call_operand.vmem [shape: f32[1,36], index: 4, kind: input, shape index: {}]   ;;  %s1984_s5 = inlined_call_operand.vmem [shape: f32[128,128], index: 5, kind: input, shape index: {}]   ;;  %s1985_s6 = inlined_call_operand.hbm [shape: f32[32,64], index: 6, kind: output, shape index: {}]  }
   0x1   :  { %v52_v0 = vld [vmem:[%s1979_s0 + $0x10] sm:$0xff]  ;;  %v34_v1 = vld [vmem:[%s1979_s0] sm:$0xff]  ;;  %v53_v2 = vld [vmem:[%s1979_s0 + $0x18] sm:$0xff]  ;;  %29 = vst.msk [vmem:[#allocation2 + $0x18] sm:$0xff] %vm25_vm0, %v1479_v4  ;;  %279 = vmatprep.subr.bf16.mxu0 %v1480_v6 }
   0x2   :  { %56 = vrot.lane.b32.xlu1 %v52_v0, %s1478_s25  ;;  %38 = vrot.lane.b32.xlu0 %v34_v1, %s1478_s25  ;;  %v35_v3 = vld [vmem:[%s1979_s0 + $0x8] sm:$0xff]  ;;  %30 = vst.msk [vmem:[#allocation2 + $0x20] sm:$0xff] %vm25_vm0, %v1479_v4  ;;  %26 = vst.msk [vmem:[#allocation2] sm:$0xff] %vm25_vm0, %v1479_v4  ;;  %v1422_v5 = vld [vmem:[%s1980_s1] sm:$0xff]  }
   0x3   :  { %27 = vst.msk [vmem:[#allocation2 + $0x8] sm:$0xff] %vm25_vm0, %v1479_v4  ;;  %28 = vst.msk [vmem:[#allocation2 + $0x10] sm:$0xff] %vm25_vm0, %v1479_v4  ;;  %280 = vmatpush1.bf16.msra.mxu0 %v1422_v5  ;;  %v1423_v7 = vld [vmem:[%s1980_s1 + $0x8] sm:$0xff]   ;;  %v1424_v8 = vld [vmem:[%s1980_s1 + $0x10] sm:$0xff]  }
   0x4   :  { %31 = vst.msk [vmem:[#allocation2 + $0x28] sm:$0xff] %vm25_vm0, %v1479_v4  ;;  %281 = vmatprep.subr.bf16.mxu0 %v1480_v6  ;;  %v1425_v9 = vld [vmem:[%s1980_s1 + $0x18] sm:$0xff]  }
   0x6   :  { %58 = vrot.lane.b32.xlu1 %v53_v2, %s1478_s25  ;;  %40 = vrot.lane.b32.xlu0 %v35_v3, %s1478_s25 }
   0x7   :  { %282 = vmatpush1.bf16.msra.mxu0 %v1423_v7 }
   0x8   :  { %283 = vmatprep.subr.bf16.mxu0 %v1480_v6 }
   0xb   :  { %284 = vmatpush1.bf16.msra.mxu0 %v1424_v8 }
   0xc   :  { %285 = vmatprep.subr.bf16.mxu0 %v1480_v6 }
   0xd   :  { %11 = vsyncpa [#allocation4], 0  ;;  %v1426_v10 = vld [vmem:[%s1980_s1 + $0x20] sm:$0xff]   ;;  %v1427_v11 = vld [vmem:[%s1980_s1 + $0x28] sm:$0xff]   ;;  %vm44_vm1 = vcmask 31744   ;;  %vm47_vm2 = vcmask 556032  }
   0xe   :  { %v1428_v12 = vld [vmem:[%s1980_s1 + $0x30] sm:$0xff]   ;;  %v1429_v13 = vld [vmem:[%s1980_s1 + $0x38] sm:$0xff]   ;;  %v1430_v14 = vld [vmem:[%s1980_s1 + $0x40] sm:$0xff]   ;;  %vm275_vm3 = vcmask 1043456   ;;  %s1482_s11 = smov 72   ;;  %vm145_vm4 = vcmask 130048  }
   0xf   :  { %286 = vmatpush1.bf16.msra.mxu0 %v1425_v9  ;;  %v1431_v15 = vld [vmem:[%s1980_s1 + $0x48] sm:$0xff]   ;;  %v1432_v16 = vld [vmem:[%s1980_s1 + $0x50] sm:$0xff]   ;;  %v1433_v17 = vld [vmem:[%s1980_s1 + $0x58] sm:$0xff]   ;;  %vm265_vm5 = vcmask 719872   ;;  %s1484_s12 = smov 64   ;;  %vm1485_vm6 = vmmov 0  }
  0x10   :  { %287 = vmatprep.subr.bf16.mxu0 %v1480_v6  ;;  %v1434_v18 = vld [vmem:[%s1980_s1 + $0x60] sm:$0xff]   ;;  %v1435_v27 = vld [vmem:[%s1980_s1 + $0x68] ss:$0 sps:$4 sm:$0xff]   ;;  %s1481_s1 = smov 16   ;;  %1205 = vmatprep.mubr.msk.f32.mxu1 %vm1485_vm6, %v1479_v4  ;;  %vm362_vm7 = vcmask 523264   ;;  %vm368_vm8 = vcmask 293888  }
  0x11   :  { %v277_v32 = vsel %vm275_vm3, %v1435_v27, 0  ;;  %vm557_vm9 = vcmask 1046528   ;;  %vm577_vm10 = vcmask 1044480   ;;  %vm1055_vm11 = vcmask 1040384  }
  0x12   :  { %vm1077_vm12 = vcmask 1042432   ;;  %vm1068_vm13 = vcmask 523265   ;;  %vm1071_vm14 = vcmask 516096   ;;  %vm1090_vm15 = vcmask 523267  }
  0x13   :  { %288 = vmatpush1.bf16.msra.mxu0 %v1426_v10 }
  0x14   :  { %289 = vmatprep.subr.bf16.mxu0 %v1480_v6 }
  0x17   :  { %290 = vmatpush1.bf16.msra.mxu0 %v1427_v11 }
  0x18   :  { %291 = vmatprep.subr.bf16.mxu0 %v1480_v6 }
  0x1b   :  { %292 = vmatpush1.bf16.msra.mxu0 %v1428_v12 }
  0x1c   :  { %293 = vmatprep.subr.bf16.mxu0 %v1480_v6 }
  0x1f   :  { %294 = vmatpush1.bf16.msra.mxu0 %v1429_v13 }
  0x20   :  { %295 = vmatprep.subr.bf16.mxu0 %v1480_v6 }
  0x23   :  { %296 = vmatpush1.bf16.msra.mxu0 %v1430_v14 }
  0x24   :  { %297 = vmatprep.subr.bf16.mxu0 %v1480_v6 }
  0x27   :  { %298 = vmatpush1.bf16.msra.mxu0 %v1431_v15 }
  0x28   :  { %299 = vmatprep.subr.bf16.mxu0 %v1480_v6 }
  0x2b   :  { %300 = vmatpush1.bf16.msra.mxu0 %v1432_v16 }
  0x2c   :  { %301 = vmatprep.subr.bf16.mxu0 %v1480_v6 }
  0x2f   :  { %302 = vmatpush1.bf16.msra.mxu0 %v1433_v17 }
  0x30   :  { %303 = vmatprep.subr.bf16.mxu0 %v1480_v6 }
  0x33   :  { %304 = vmatpush1.bf16.msra.mxu0 %v1434_v18 }
  0x34   :  { %305 = vmatprep.subr.bf16.mxu0 %v1480_v6 }
  0x37   :  { %306 = vmatpush1.bf16.msra.mxu0 %v277_v32 }
  0x74   :  { %v57_v19 = vpop.permute.xlu1 %56  ;;  %v39_v20 = vpop.permute.xlu0 %38 }
  0x75   :  { %v62_v21 = vsel %vm44_vm1, 0.0, %v57_v19  ;;  %v45_v22 = vsel %vm44_vm1, 0.0, %v39_v20  ;;  %v1483_v20 = vmov 0.0|0.0  }
  0x76   :  { %v64_v23 = vsel %vm47_vm2, %v62_v21, 0.0  ;;  %v48_v24 = vsel %vm47_vm2, %v45_v22, 0.0  ;;  %1291 = vmatprep.subr.bf16.mxu1 %v1483_v20  ;;  %1321 = vmatprep.subr.bf16.mxu0 %v1483_v20 }
  0x77   :  { %66 = vst.msk [vmem:[#allocation2 + $0x1b] sm:$0xff] %vm25_vm0, %v64_v23  ;;  %50 = vst.msk [vmem:[#allocation2 + $0x9] sm:$0xff] %vm25_vm0, %v48_v24 }
  0x78   :  { %v59_v25 = vpop.permute.xlu1 %58  ;;  %v41_v26 = vpop.permute.xlu0 %40 }
  0x79   :  { %v63_v28 = vsel %vm44_vm1, 0.0, %v59_v25  ;;  %v46_v29 = vsel %vm44_vm1, 0.0, %v41_v26 }
  0x7a   :  { %v65_v30 = vsel %vm47_vm2, %v63_v28, 0.0  ;;  %v49_v31 = vsel %vm47_vm2, %v46_v29, 0.0 }
  0x7b   :  { %67 = vst.msk [vmem:[#allocation2 + $0x23] sm:$0xff] %vm25_vm0, %v65_v30  ;;  %51 = vst.msk [vmem:[#allocation2 + $0x11] sm:$0xff] %vm25_vm0, %v49_v31 }
  0x7e   :  { %v95_v33 = vld [vmem:[#allocation2 + $0x9] sm:$0xff]  ;;  %v97_v35 = vld [vmem:[#allocation2 + $0x19] sm:$0xff] }
  0x7f   :  { %v90_v34 = vld [vmem:[#allocation2 + $0x8] sm:$0xff] }
  0x80   :  { %v85_v53 = vld [vmem:[#allocation2 + $0x7] sm:$0xff] }
  0x82   :  { %v96_v36 = vld [vmem:[#allocation2 + $0x11] sm:$0xff]  ;;  %v98_v38 = vld [vmem:[#allocation2 + $0x21] sm:$0xff]  ;;  %v99_v45 = vld [vmem:[#allocation2 + $0x29] sm:$0xf] }
  0x83   :  { %v91_v37 = vld [vmem:[#allocation2 + $0x10] sm:$0xff]  ;;  %v1367_v39 = vpack.i.bf16 %v96_v36, %v95_v33  ;;  %v92_v41 = vld [vmem:[#allocation2 + $0x18] sm:$0xff]  ;;  %v93_v42 = vld [vmem:[#allocation2 + $0x20] sm:$0xff]  ;;  %v1377_v43 = vpack.i.bf16 %v98_v38, %v97_v35 }
  0x84   :  { %v1362_v40 = vpack.i.bf16 %v91_v37, %v90_v34  ;;  %v1372_v44 = vpack.i.bf16 %v93_v42, %v92_v41  ;;  %v94_v46 = vld [vmem:[#allocation2 + $0x28] sm:$0xf]  ;;  %v86_v54 = vld [vmem:[#allocation2 + $0xf] sm:$0xff]  ;;  %v87_v10 = vld [vmem:[#allocation2 + $0x17] sm:$0xff] }
  0x85   :  { %1368 = vrot.lane.b32.xlu1 %v1367_v39, %s1481_s1  ;;  %v88_v11 = vld [vmem:[#allocation2 + $0x1f] sm:$0xff]  ;;  %v89_v17 = vld [vmem:[#allocation2 + $0x27] sm:$0xf] }
  0x86   :  { %1363 = vrot.lane.b32.xlu0 %v1362_v40, %s1482_s11 }
  0x89   :  { %1378 = vrot.lane.b32.xlu1 %v1377_v43, %s1481_s1 }
  0x8a   :  { %1373 = vrot.lane.b32.xlu0 %v1372_v44, %s1482_s11 }
  0x8d   :  { %133 = vrot.lane.b32.xlu1 %v99_v45, %s1481_s1 }
  0x8e   :  { %113 = vrot.lane.b32.xlu0 %v94_v46, %s1482_s11 }
  0xf7   :  { %v1369_v47 = vpop.permute.xlu1 %1368 }
  0xf8   :  { %v1364_v48 = vpop.permute.xlu0 %1363  ;;  %v1371_v49 = vunpack.i.h.bf16 %v1369_v47  ;;  %v1370_v50 = vunpack.i.l.bf16 %v1369_v47 }
  0xf9   :  { %v1366_v51 = vunpack.i.h.bf16 %v1364_v48  ;;  %v1365_v52 = vunpack.i.l.bf16 %v1364_v48 }
  0xfb   :  { %v146_v55 = vsel %vm145_vm4, %v1365_v52, %v1370_v50  ;;  %v147_v56 = vsel %vm145_vm4, %v1366_v51, %v1371_v49  ;;  %v140_v57 = vsel %vm25_vm0, %v85_v53, %v1365_v52  ;;  %v141_v58 = vsel %vm25_vm0, %v86_v54, %v1366_v51  ;;  %v1379_v59 = vpop.permute.xlu1 %1378  ;;  %v69_v52 = vld [vmem:[%s1984_s5] sm:$0xff]  ;;  %v70_v53 = vld [vmem:[%s1984_s5 + $0x8] sm:$0xff] }
  0xfc   :  { %v1374_v60 = vpop.permute.xlu0 %1373  ;;  %v152_v61 = vpack.c.bf16 %v147_v56, %v146_v55  ;;  %v151_v62 = vpack.c.bf16 %v141_v58, %v140_v57  ;;  %v1381_v63 = vunpack.i.h.bf16 %v1379_v59  ;;  %v1380_v0 = vunpack.i.l.bf16 %v1379_v59  ;;  %v1688_v55 = vld [vmem:[%s1983_s4] sm:$0x1]  ;;  %v71_v58 = vld [vmem:[%s1984_s5 + $0x10] sm:$0xff]  ;;  %v72_v59 = vld [vmem:[%s1984_s5 + $0x18] sm:$0xff] }
  0xfd   :  { %v1376_v1 = vunpack.i.h.bf16 %v1374_v60  ;;  %v1375_v2 = vunpack.i.l.bf16 %v1374_v60  ;;  %v1690_v56 = vpack.c.bf16 %v70_v53, %v69_v52  ;;  %v1705_v60 = vpack.c.bf16 %v72_v59, %v71_v58 }
  0xfe   :  { %1125 = vmatprep.mubr.msk.bf16.mxu0 %vm265_vm5, %v152_v61  ;;  %v73_v61 = vld [vmem:[%s1984_s5 + $0x20] sm:$0xff] }
  0xff   :  { %v149_v3 = vsel %vm145_vm4, %v1376_v1, %v1381_v63  ;;  %v148_v5 = vsel %vm145_vm4, %v1375_v2, %v1380_v0  ;;  %312 = vmatmul.mubr.bf16.vlgmr.msra.gmra.mrb[0].mxu0 %v151_v62  ;;  %v134_v8 = vpop.permute.xlu1 %133  ;;  %v142_v12 = vsel %vm25_vm0, %v87_v10, %v1375_v2  ;;  %v143_v13 = vsel %vm25_vm0, %v88_v11, %v1376_v1  ;;  %v74_v62 = vld [vmem:[%s1984_s5 + $0x28] sm:$0xff]  ;;  %v75_v0 = vld [vmem:[%s1984_s5 + $0x30] sm:$0xff]  ;;  %v76_v1 = vld [vmem:[%s1984_s5 + $0x38] sm:$0xff] }
 0x100   :  { %v154_v7 = vpack.c.bf16 %v149_v3, %v148_v5  ;;  %v114_v9 = vpop.permute.xlu0 %113  ;;  %v153_v15 = vpack.c.bf16 %v143_v13, %v142_v12  ;;  %v1717_v63 = vpack.c.bf16 %v74_v62, %v73_v61  ;;  %v1727_v2 = vpack.c.bf16 %v76_v1, %v75_v0  ;;  %v77_v3 = vld [vmem:[%s1984_s5 + $0x40] sm:$0xff]  ;;  %v78_v5 = vld [vmem:[%s1984_s5 + $0x48] sm:$0xff] }
 0x101   :  { %v150_v14 = vsel %vm145_vm4, %v114_v9, %v134_v8  ;;  %v144_v18 = vsel %vm25_vm0, %v89_v17, %v114_v9  ;;  %v79_v8 = vld [vmem:[%s1984_s5 + $0x50] sm:$0xff]  ;;  %v80_v9 = vld [vmem:[%s1984_s5 + $0x58] sm:$0xff]  ;;  %v81_v11 = vld [vmem:[%s1984_s5 + $0x60] sm:$0xff] }
 0x102   :  { %1126 = vmatprep.mubr.msk.bf16.mxu0 %vm265_vm5, %v154_v7  ;;  %v156_v16 = vpack.c.bf16 %v150_v14, %v150_v14  ;;  %v155_v19 = vpack.c.bf16 %v144_v18, %v144_v18  ;;  %v1737_v7 = vpack.c.bf16 %v78_v5, %v77_v3  ;;  %v1747_v10 = vpack.c.bf16 %v80_v9, %v79_v8  ;;  %v82_v12 = vld [vmem:[%s1984_s5 + $0x68] sm:$0xff]  ;;  %v83_v14 = vld [vmem:[%s1984_s5 + $0x70] sm:$0xff]  ;;  %v1436_v8 = vld [vmem:[%s1981_s2] sm:$0xff]  }
 0x103   :  { %v1757_v13 = vpack.c.bf16 %v82_v12, %v81_v11  ;;  %v1437_v9 = vld [vmem:[%s1981_s2 + $0x8] sm:$0xff]   ;;  %v1438_v11 = vld [vmem:[%s1981_s2 + $0x10] sm:$0xff]   ;;  %v1439_v12 = vld [vmem:[%s1981_s2 + $0x18] sm:$0xff]  }
 0x107   :  { %320 = vmatmul.mubr.bf16.gmra.mrb[4].mxu0 %v153_v15  ;;  %v84_v15 = vld [vmem:[%s1984_s5 + $0x78] sm:$0xff] }
 0x108   :  { %1127 = vmatprep.mubr.msk.bf16.mxu0 %vm265_vm5, %v156_v16  ;;  %v1767_v16 = vpack.c.bf16 %v84_v15, %v83_v14  ;;  %v1440_v14 = vld [vmem:[%s1981_s2 + $0x20] sm:$0xff]   ;;  %v1441_v15 = vld [vmem:[%s1981_s2 + $0x28] sm:$0xff]  }
 0x10f   :  { %328 = vmatmul.mubr.bf16.gmra.mrb[8].mxu0 %v155_v19 }
 0x110   :  { %1253 = vmatprep.mubr.msk.f32.mxu0 %vm1485_vm6, %v1479_v4 }
 0x1d2   :  { %v1642_v21 = vpop.f32.mrb[0].mxu0 }
 0x1d3   :  { %v315_v22 = vpop.f32.mrb[1].mxu0  ;;  %v337_v24 = vmul.f32 %v1642_v21, %v1642_v21 }
 0x1d4   :  { %v1644_v23 = vpop.f32.mrb[2].mxu0 }
 0x1d5   :  { %v338_v25 = vmul.f32 %v1644_v23, %v1644_v23  ;;  %v318_v26 = vpop.f32.mrb[3].mxu0 }
 0x1d7   :  { %v1382_v27 = vpack.i.bf16 %v338_v25, %v337_v24 }
 0x1d9   :  { %1383 = vrot.lane.b32.xlu0 %v1382_v27, %s1484_s12 }
 0x1da   :  { %v1651_v28 = vpop.f32.mrb[4].mxu0 }
 0x1db   :  { %v323_v29 = vpop.f32.mrb[5].mxu0  ;;  %v339_v31 = vmul.f32 %v1651_v28, %v1651_v28 }
 0x1dc   :  { %v1653_v30 = vpop.f32.mrb[6].mxu0 }
 0x1dd   :  { %v340_v32 = vmul.f32 %v1653_v30, %v1653_v30  ;;  %v326_v33 = vpop.f32.mrb[7].mxu0 }
 0x1df   :  { %v1387_v34 = vpack.i.bf16 %v340_v32, %v339_v31  ;;  %v531_v32 = vlaneseq }
 0x1e1   :  { %1388 = vrot.lane.b32.xlu1 %v1387_v34, %s1484_s12  ;;  %v532_v33 = vshrl.u32 %v531_v32, 7  ;;  %v335_v34 = vld [vmem:[%s1982_s3] sm:$0x1] }
 0x1e2   :  { %v1664_v35 = vpop.f32.mrb[8].mxu0 }
 0x1e3   :  { %v341_v36 = vmul.f32 %v1664_v35, %v1664_v35  ;;  %v331_v37 = vpop.f32.mrb[9].mxu0 }
 0x1e4   :  { %v332_v38 = vpop.f32.mrb[10].mxu0 }
 0x1e5   :  { %355 = vrot.lane.b32.xlu0 %v341_v36, %s1484_s12  ;;  %v333_v39 = vpop.f32.mrb[11].mxu0  ;;  %v1777_v36 = vsub.s32 0, %v532_v33 }
 0x1e6   :  { %v336_v39 = vld [vmem:[%s1982_s3 + $0x1] sm:$0x1] }
 0x24b   :  { %v1384_v40 = vpop.permute.xlu0 %1383 }
 0x24c   :  { %v1386_v41 = vunpack.i.h.bf16 %v1384_v40  ;;  %v1385_v42 = vunpack.i.l.bf16 %v1384_v40 }
 0x24e   :  { %v363_v43 = vsel %vm362_vm7, %v1642_v21, %v1385_v42  ;;  %v364_v44 = vsel %vm362_vm7, %v1644_v23, %v1386_v41 }
 0x24f   :  { %v1292_v45 = vpack.c.bf16 %v364_v44, %v363_v43 }
 0x251   :  { %1293 = vmatpush3.bf16.msra.mxu1 %v1292_v45 }
 0x252   :  { %1294 = vmatprep.subr.bf16.mxu1 %v1483_v20 }
 0x253   :  { %v1389_v46 = vpop.permute.xlu1 %1388 }
 0x254   :  { %v1391_v47 = vunpack.i.h.bf16 %v1389_v46  ;;  %v1390_v48 = vunpack.i.l.bf16 %v1389_v46 }
 0x256   :  { %v365_v49 = vsel %vm362_vm7, %v1651_v28, %v1390_v48  ;;  %v366_v50 = vsel %vm362_vm7, %v1653_v30, %v1391_v47 }
 0x257   :  { %v1295_v51 = vpack.c.bf16 %v366_v50, %v365_v49  ;;  %v356_v54 = vpop.permute.xlu0 %355 }
 0x258   :  { %v367_v57 = vsel %vm362_vm7, %v1664_v35, %v356_v54 }
 0x259   :  { %1296 = vmatpush3.bf16.msra.mxu1 %v1295_v51 }
 0x25a   :  { %1203 = vmatprep.subr.mxu1 %v1479_v4 }
 0x25d   :  { %1204 = vmatpush3.msk.msra.mxu1 %vm275_vm3, %v367_v57 }
 0x25e   :  { %1206 = vmatmul.mubr.msk.f32.vlgmr.msra.gmra.mrb[0].mxu1 %vm368_vm8, %v1688_v55  ;;  %1297 = vmatprep.subr.bf16.mxu1 %v1483_v20 }
 0x25f   :  { %1299 = vmatpush3.bf16.msra.mxu1 %v1690_v56  ;;  %1240 = vmatprep.mubr.msk.f32.mxu1 %vm1485_vm6, %v1479_v4 }
 0x260   :  { %1300 = vmatprep.subr.bf16.mxu1 %v1483_v20 }
 0x263   :  { %1302 = vmatpush3.bf16.msra.mxu1 %v1705_v60 }
 0x264   :  { %1303 = vmatprep.subr.bf16.mxu1 %v1483_v20 }
 0x267   :  { %1305 = vmatpush3.bf16.msra.mxu1 %v1717_v63 }
 0x268   :  { %1306 = vmatprep.subr.bf16.mxu1 %v1483_v20 }
 0x26b   :  { %1308 = vmatpush3.bf16.msra.mxu1 %v1727_v2 }
 0x26c   :  { %1309 = vmatprep.subr.bf16.mxu1 %v1483_v20 }
 0x26f   :  { %1311 = vmatpush3.bf16.msra.mxu1 %v1737_v7 }
 0x270   :  { %1312 = vmatprep.subr.bf16.mxu1 %v1483_v20 }
 0x273   :  { %1314 = vmatpush3.bf16.msra.mxu1 %v1747_v10 }
 0x274   :  { %1315 = vmatprep.subr.bf16.mxu1 %v1483_v20 }
 0x277   :  { %1317 = vmatpush3.bf16.msra.mxu1 %v1757_v13 }
 0x278   :  { %1318 = vmatprep.subr.bf16.mxu1 %v1483_v20 }
 0x27b   :  { %1320 = vmatpush3.bf16.msra.mxu1 %v1767_v16 }
 0x27c   :  { %786 = vmatprep.subr.bf16.mxu1 %v1480_v6 }
 0x331   :  { %v441_v17 = vpop.f32.mrb[0].mxu1 }
 0x332   :  { %v1207_v18 = vpop.f32.mrb[1].mxu1  ;;  %1241 = vmatmul.mubr.f32.vlgmr.msra.gmra.mrb[2].mxu1 %v441_v17  ;;  %v1442_v17 = vld [vmem:[%s1981_s2 + $0x30] sm:$0xff]  }
 0x333   :  { %787 = vmatpush1.bf16.msra.mxu1 %v1436_v8  ;;  %v1443_v18 = vld [vmem:[%s1981_s2 + $0x38] sm:$0xff]  }
 0x334   :  { %788 = vmatprep.subr.bf16.mxu1 %v1480_v6 }
 0x337   :  { %789 = vmatpush1.bf16.msra.mxu1 %v1437_v9 }
 0x338   :  { %790 = vmatprep.subr.bf16.mxu1 %v1480_v6 }
 0x33b   :  { %791 = vmatpush1.bf16.msra.mxu1 %v1438_v11 }
 0x33c   :  { %792 = vmatprep.subr.bf16.mxu1 %v1480_v6 }
 0x33f   :  { %793 = vmatpush1.bf16.msra.mxu1 %v1439_v12 }
 0x340   :  { %794 = vmatprep.subr.bf16.mxu1 %v1480_v6 }
 0x343   :  { %795 = vmatpush1.bf16.msra.mxu1 %v1440_v14 }
 0x344   :  { %796 = vmatprep.subr.bf16.mxu1 %v1480_v6 }
 0x347   :  { %797 = vmatpush1.bf16.msra.mxu1 %v1441_v15 }
 0x348   :  { %798 = vmatprep.subr.bf16.mxu1 %v1480_v6 }
 0x34b   :  { %799 = vmatpush1.bf16.msra.mxu1 %v1442_v17 }
 0x34c   :  { %800 = vmatprep.subr.bf16.mxu1 %v1480_v6 }
 0x34f   :  { %801 = vmatpush1.bf16.msra.mxu1 %v1443_v18 }
 0x350   :  { %802 = vmatprep.subr.bf16.mxu1 %v1480_v6 }
 0x405   :  { %v511_v19 = vpop.f32.mrb[2].mxu1 }
 0x406   :  { %v515_v22 = vmul.f32 %v511_v19, %v511_v19  ;;  %v1242_v24 = vpop.f32.mrb[3].mxu1 }
 0x407   :  { %v1446_v24 = vld [vmem:[%s1981_s2 + $0x50] sm:$0xff]  }
 0x408   :  { %517 = vrot.lane.b32.xlu1 %v515_v22, %s1484_s12  ;;  %v1445_v22 = vld [vmem:[%s1981_s2 + $0x48] sm:$0xff]  }
 0x47a   :  { %v518_v25 = vpop.permute.xlu1 %517 }
 0x47b   :  { %v520_v26 = vsub.f32 %v511_v19, %v518_v25  ;;  %v1447_v25 = vld [vmem:[%s1981_s2 + $0x58] sm:$0xff]  }
 0x47d   :  { %v521_v27 = vmax.f32 %v520_v26, 0.0  ;;  %v1448_v26 = vld [vmem:[%s1981_s2 + $0x60] sm:$0xff]  }
 0x47f   :  { %v522_v29 = vadd.f32 1e-05, %v521_v27 }
 0x481   :  { %1450 = vrsqrt.f32 %v522_v29 }
 0x48b   :  { %v1451_v31 = vpop.eup %1450 }
 0x48c   :  { %525 = vrot.lane.b32.xlu0 %v1451_v31, %s1484_s12 }
 0x4fe   :  { %v526_v37 = vpop.permute.xlu0 %525 }
 0x4ff   :  { %v528_v38 = vmul.f32 %v526_v37, %v335_v34  ;;  %v1449_v37 = vld [vmem:[%s1981_s2 + $0x68] ss:$0 sps:$4 sm:$0xff]  }
 0x501   :  { %v529_v40 = vmul.f32 %v528_v38, %v511_v19  ;;  %v534_v41 = vrot.slane %v528_v38, %v1777_v36  ;;  %v1444_v19 = vld [vmem:[%s1981_s2 + $0x40] sm:$0xff]  }
 0x502   :  { %803 = vmatpush1.bf16.msra.mxu1 %v1444_v19 }
 0x503   :  { %v530_v42 = vsub.f32 %v336_v39, %v529_v40  ;;  %v536_v43 = vmul.f32 %v534_v41, %v1644_v23  ;;  %v537_v45 = vmul.f32 %v534_v41, %v1651_v28  ;;  %v535_v46 = vmul.f32 %v534_v41, %v1642_v21  ;;  %804 = vmatprep.subr.bf16.mxu1 %v1480_v6 }
 0x504   :  { %v538_v47 = vmul.f32 %v534_v41, %v1653_v30  ;;  %v539_v48 = vmul.f32 %v534_v41, %v1664_v35  ;;  %v784_v41 = vsel %vm275_vm3, %v1449_v37, 0 }
 0x505   :  { %v543_v44 = vrot.slane %v530_v42, %v1777_v36 }
 0x506   :  { %805 = vmatpush1.bf16.msra.mxu1 %v1445_v22 }
 0x507   :  { %v545_v49 = vadd.f32 %v543_v44, %v536_v43  ;;  %v546_v50 = vadd.f32 %v543_v44, %v537_v45  ;;  %v544_v51 = vadd.f32 %v543_v44, %v535_v46  ;;  %v547_v52 = vadd.f32 %v543_v44, %v538_v47  ;;  %806 = vmatprep.subr.bf16.mxu1 %v1480_v6 }
 0x508   :  { %v548_v53 = vadd.f32 %v543_v44, %v539_v48 }
 0x509   :  { %v550_v54 = vmax.f32 %v545_v49, 0.0  ;;  %v551_v57 = vmax.f32 %v546_v50, 0.0  ;;  %v549_v58 = vmax.f32 %v544_v51, 0.0  ;;  %v552_v59 = vmax.f32 %v547_v52, 0.0 }
 0x50a   :  { %v553_v23 = vmax.f32 %v548_v53, 0.0  ;;  %807 = vmatpush1.bf16.msra.mxu1 %v1446_v24 }
 0x50b   :  { %v559_v61 = vrot.slane %v550_v54, 1  ;;  %v561_v28 = vrot.slane %v551_v57, 1  ;;  %v558_v62 = vrot.slane %v549_v58, 1  ;;  %v579_v21 = vrot.slane %v552_v59, 3  ;;  %808 = vmatprep.subr.bf16.mxu1 %v1480_v6 }
 0x50c   :  { %v581_v0 = vrot.slane %v553_v23, 3  ;;  %v578_v30 = vrot.slane %v551_v57, 3 }
 0x50d   :  { %v562_v1 = vsel %vm557_vm9, %v559_v61, %v561_v28  ;;  %v560_v35 = vsel %vm557_vm9, %v558_v62, %v559_v61 }
 0x50e   :  { %565 = vrot.lane.b32.xlu0 %v562_v1, %s1478_s25  ;;  %563 = vrot.lane.b32.xlu1 %v560_v35, %s1478_s25  ;;  %v582_v3 = vsel %vm577_vm10, %v579_v21, %v581_v0  ;;  %v580_v5 = vsel %vm577_vm10, %v578_v30, %v579_v21 }
 0x50f   :  { %809 = vmatpush1.bf16.msra.mxu1 %v1447_v25 }
 0x510   :  { %810 = vmatprep.subr.bf16.mxu1 %v1480_v6 }
 0x512   :  { %585 = vrot.lane.b32.xlu0 %v582_v3, %s1478_s25  ;;  %583 = vrot.lane.b32.xlu1 %v580_v5, %s1478_s25 }
 0x513   :  { %811 = vmatpush1.bf16.msra.mxu1 %v1448_v26 }
 0x514   :  { %812 = vmatprep.subr.bf16.mxu1 %v1480_v6 }
 0x517   :  { %813 = vmatpush1.bf16.msra.mxu1 %v784_v41 }
 0x580   :  { %v566_v27 = vpop.permute.xlu0 %565  ;;  %v564_v29 = vpop.permute.xlu1 %563 }
 0x581   :  { %v570_v31 = vsel %vm44_vm1, 0.0, %v566_v27  ;;  %v569_v32 = vsel %vm44_vm1, 0.0, %v564_v29 }
 0x582   :  { %v572_v33 = vsel %vm47_vm2, %v570_v31, 0.0  ;;  %v571_v34 = vsel %vm47_vm2, %v569_v32, 0.0 }
 0x583   :  { %574 = vst.msk [vmem:[#allocation2 + $0x11] sm:$0xff] %vm25_vm0, %v572_v33  ;;  %573 = vst.msk [vmem:[#allocation2 + $0x9] sm:$0xff] %vm25_vm0, %v571_v34 }
 0x584   :  { %v586_v38 = vpop.permute.xlu0 %585  ;;  %v584_v6 = vpop.permute.xlu1 %583 }
 0x585   :  { %v590_v39 = vsel %vm44_vm1, 0.0, %v586_v38  ;;  %v589_v40 = vsel %vm44_vm1, 0.0, %v584_v6 }
 0x586   :  { %v592_v42 = vsel %vm47_vm2, %v590_v39, 0.0  ;;  %v591_v43 = vsel %vm47_vm2, %v589_v40, 0.0 }
 0x587   :  { %594 = vst.msk [vmem:[#allocation2 + $0x23] sm:$0xff] %vm25_vm0, %v592_v42  ;;  %593 = vst.msk [vmem:[#allocation2 + $0x1b] sm:$0xff] %vm25_vm0, %v591_v43 }
 0x58a   :  { %v605_v44 = vld [vmem:[#allocation2 + $0x9] sm:$0xff]  ;;  %v606_v45 = vld [vmem:[#allocation2 + $0x11] sm:$0xff] }
 0x58b   :  { %v600_v46 = vld [vmem:[#allocation2 + $0x8] sm:$0xff]  ;;  %v1397_v47 = vpack.i.bf16 %v606_v45, %v605_v44  ;;  %v601_v48 = vld [vmem:[#allocation2 + $0x10] sm:$0xff] }
 0x58c   :  { %v1392_v49 = vpack.i.bf16 %v601_v48, %v600_v46  ;;  %v595_v30 = vld [vmem:[#allocation2 + $0x7] sm:$0xff]  ;;  %v596_v1 = vld [vmem:[#allocation2 + $0xf] sm:$0xff] }
 0x58d   :  { %1398 = vrot.lane.b32.xlu0 %v1397_v47, %s1481_s1 }
 0x58e   :  { %1393 = vrot.lane.b32.xlu1 %v1392_v49, %s1482_s11  ;;  %v607_v50 = vld [vmem:[#allocation2 + $0x19] sm:$0xff]  ;;  %v608_v51 = vld [vmem:[#allocation2 + $0x21] sm:$0xff]  ;;  %v609_v58 = vld [vmem:[#allocation2 + $0x29] sm:$0xf] }
 0x58f   :  { %v602_v52 = vld [vmem:[#allocation2 + $0x18] sm:$0xff]  ;;  %v1407_v53 = vpack.i.bf16 %v608_v51, %v607_v50  ;;  %v603_v54 = vld [vmem:[#allocation2 + $0x20] sm:$0xff]  ;;  %v604_v59 = vld [vmem:[#allocation2 + $0x28] sm:$0xf] }
 0x590   :  { %v1402_v57 = vpack.i.bf16 %v603_v54, %v602_v52  ;;  %v597_v29 = vld [vmem:[#allocation2 + $0x17] sm:$0xff]  ;;  %v598_v31 = vld [vmem:[#allocation2 + $0x1f] sm:$0xff]  ;;  %v599_v6 = vld [vmem:[#allocation2 + $0x27] sm:$0xf] }
 0x591   :  { %1408 = vrot.lane.b32.xlu0 %v1407_v53, %s1481_s1 }
 0x592   :  { %1403 = vrot.lane.b32.xlu1 %v1402_v57, %s1482_s11 }
 0x595   :  { %643 = vrot.lane.b32.xlu0 %v609_v58, %s1481_s1 }
 0x596   :  { %623 = vrot.lane.b32.xlu1 %v604_v59, %s1482_s11 }
 0x5ff   :  { %v1399_v23 = vpop.permute.xlu0 %1398 }
 0x600   :  { %v1401_v61 = vunpack.i.h.bf16 %v1399_v23  ;;  %v1400_v28 = vunpack.i.l.bf16 %v1399_v23  ;;  %v1394_v62 = vpop.permute.xlu1 %1393 }
 0x601   :  { %v1396_v21 = vunpack.i.h.bf16 %v1394_v62  ;;  %v1395_v0 = vunpack.i.l.bf16 %v1394_v62 }
 0x603   :  { %v651_v35 = vsel %vm25_vm0, %v596_v1, %v1396_v21  ;;  %v656_v3 = vsel %vm145_vm4, %v1396_v21, %v1401_v61  ;;  %v650_v5 = vsel %vm25_vm0, %v595_v30, %v1395_v0  ;;  %v655_v8 = vsel %vm145_vm4, %v1395_v0, %v1400_v28  ;;  %v1409_v9 = vpop.permute.xlu0 %1408 }
 0x604   :  { %v660_v11 = vpack.c.bf16 %v651_v35, %v650_v5  ;;  %v661_v12 = vpack.c.bf16 %v656_v3, %v655_v8  ;;  %v1411_v14 = vunpack.i.h.bf16 %v1409_v9  ;;  %v1410_v15 = vunpack.i.l.bf16 %v1409_v9  ;;  %v1404_v17 = vpop.permute.xlu1 %1403 }
 0x605   :  { %v1406_v18 = vunpack.i.h.bf16 %v1404_v17  ;;  %v1405_v19 = vunpack.i.l.bf16 %v1404_v17 }
 0x606   :  { %1144 = vmatprep.mubr.msk.bf16.mxu1 %vm265_vm5, %v661_v12 }
 0x607   :  { %v658_v22 = vsel %vm145_vm4, %v1406_v18, %v1411_v14  ;;  %v657_v24 = vsel %vm145_vm4, %v1405_v19, %v1410_v15  ;;  %819 = vmatmul.mubr.bf16.vlgmr.msra.gmra.mrb[4].mxu1 %v660_v11  ;;  %v644_v26 = vpop.permute.xlu0 %643  ;;  %v652_v32 = vsel %vm25_vm0, %v597_v29, %v1405_v19  ;;  %v653_v33 = vsel %vm25_vm0, %v598_v31, %v1406_v18  ;;  %v1052_v18 = vld [vmem:[%s1979_s0 + $0x8] sm:$0xff]  ;;  %v1073_v19 = vld [vmem:[%s1979_s0 + $0x10] sm:$0xff] }
 0x608   :  { %v663_v25 = vpack.c.bf16 %v658_v22, %v657_v24  ;;  %v624_v27 = vpop.permute.xlu1 %623  ;;  %v662_v37 = vpack.c.bf16 %v653_v33, %v652_v32  ;;  %v1074_v22 = vld [vmem:[%s1979_s0 + $0x18] sm:$0xff]  ;;  %v1057_v31 = vrot.slane %v1052_v18, 7  ;;  %v1078_v32 = vrot.slane %v1073_v19, 5 }
 0x609   :  { %v659_v34 = vsel %vm145_vm4, %v624_v27, %v644_v26  ;;  %v654_v39 = vsel %vm25_vm0, %v599_v6, %v624_v27  ;;  %v1079_v33 = vrot.slane %v1074_v22, 5  ;;  %vm1093_vm0 = vcmask 518144  }
 0x60a   :  { %1145 = vmatprep.mubr.msk.bf16.mxu1 %vm265_vm5, %v663_v25  ;;  %v665_v38 = vpack.c.bf16 %v659_v34, %v659_v34  ;;  %v664_v40 = vpack.c.bf16 %v654_v39, %v654_v39  ;;  %v843_v25 = vld [vmem:[%s1982_s3 + $0x3] sm:$0x1] }
 0x60f   :  { %827 = vmatmul.mubr.bf16.gmra.mrb[8].mxu1 %v662_v37 }
 0x610   :  { %1146 = vmatprep.mubr.msk.bf16.mxu1 %vm265_vm5, %v665_v38 }
 0x617   :  { %835 = vmatmul.mubr.bf16.gmra.mrb[12].mxu1 %v664_v40 }
 0x6da   :  { %v1880_v41 = vpop.f32.mrb[4].mxu1 }
 0x6db   :  { %v822_v42 = vpop.f32.mrb[5].mxu1  ;;  %v844_v44 = vmul.f32 %v1880_v41, %v1880_v41 }
 0x6dc   :  { %v1882_v43 = vpop.f32.mrb[6].mxu1 }
 0x6dd   :  { %v845_v45 = vmul.f32 %v1882_v43, %v1882_v43  ;;  %v825_v46 = vpop.f32.mrb[7].mxu1 }
 0x6df   :  { %v1412_v47 = vpack.i.bf16 %v845_v45, %v844_v44  ;;  %v1080_v44 = vsel %vm1077_vm12, %v1078_v32, %v1079_v33 }
 0x6e1   :  { %1413 = vrot.lane.b32.xlu1 %v1412_v47, %s1484_s12 }
 0x6e2   :  { %v1889_v48 = vpop.f32.mrb[8].mxu1 }
 0x6e3   :  { %v830_v49 = vpop.f32.mrb[9].mxu1  ;;  %v846_v51 = vmul.f32 %v1889_v48, %v1889_v48 }
 0x6e4   :  { %v1891_v50 = vpop.f32.mrb[10].mxu1 }
 0x6e5   :  { %v847_v52 = vmul.f32 %v1891_v50, %v1891_v50  ;;  %v833_v53 = vpop.f32.mrb[11].mxu1 }
 0x6e7   :  { %v1417_v54 = vpack.i.bf16 %v847_v52, %v846_v51 }
 0x6e9   :  { %1418 = vrot.lane.b32.xlu0 %v1417_v54, %s1484_s12 }
 0x6ea   :  { %v1898_v57 = vpop.f32.mrb[12].mxu1 }
 0x6eb   :  { %v848_v58 = vmul.f32 %v1898_v57, %v1898_v57  ;;  %v838_v59 = vpop.f32.mrb[13].mxu1 }
 0x6ec   :  { %v839_v23 = vpop.f32.mrb[14].mxu1 }
 0x6ed   :  { %862 = vrot.lane.b32.xlu1 %v848_v58, %s1484_s12  ;;  %v840_v61 = vpop.f32.mrb[15].mxu1 }
 0x753   :  { %v1414_v28 = vpop.permute.xlu1 %1413 }
 0x754   :  { %v1416_v62 = vunpack.i.h.bf16 %v1414_v28  ;;  %v1415_v21 = vunpack.i.l.bf16 %v1414_v28 }
 0x756   :  { %v870_v0 = vsel %vm362_vm7, %v1882_v43, %v1416_v62  ;;  %v869_v30 = vsel %vm362_vm7, %v1880_v41, %v1415_v21 }
 0x757   :  { %v1322_v1 = vpack.c.bf16 %v870_v0, %v869_v30 }
 0x759   :  { %1323 = vmatpush3.bf16.msra.mxu0 %v1322_v1 }
 0x75a   :  { %1324 = vmatprep.subr.bf16.mxu0 %v1483_v20 }
 0x75b   :  { %v1419_v35 = vpop.permute.xlu0 %1418 }
 0x75c   :  { %v1421_v3 = vunpack.i.h.bf16 %v1419_v35  ;;  %v1420_v5 = vunpack.i.l.bf16 %v1419_v35 }
 0x75e   :  { %v872_v8 = vsel %vm362_vm7, %v1891_v50, %v1421_v3  ;;  %v871_v9 = vsel %vm362_vm7, %v1889_v48, %v1420_v5 }
 0x75f   :  { %v1325_v11 = vpack.c.bf16 %v872_v8, %v871_v9  ;;  %v863_v12 = vpop.permute.xlu1 %862 }
 0x760   :  { %v873_v14 = vsel %vm362_vm7, %v1898_v57, %v863_v12 }
 0x761   :  { %1326 = vmatpush3.bf16.msra.mxu0 %v1325_v11 }
 0x762   :  { %1251 = vmatprep.subr.mxu0 %v1479_v4 }
 0x765   :  { %1252 = vmatpush3.msk.msra.mxu0 %vm275_vm3, %v873_v14 }
 0x766   :  { %1254 = vmatmul.mubr.msk.f32.vlgmr.msra.gmra.mrb[12].mxu0 %vm368_vm8, %v1688_v55  ;;  %1327 = vmatprep.subr.bf16.mxu0 %v1483_v20 }
 0x767   :  { %1329 = vmatpush3.bf16.msra.mxu0 %v1690_v56  ;;  %1288 = vmatprep.mubr.msk.f32.mxu0 %vm1485_vm6, %v1479_v4 }
 0x768   :  { %1330 = vmatprep.subr.bf16.mxu0 %v1483_v20 }
 0x76b   :  { %1332 = vmatpush3.bf16.msra.mxu0 %v1705_v60 }
 0x76c   :  { %1333 = vmatprep.subr.bf16.mxu0 %v1483_v20 }
 0x76f   :  { %1335 = vmatpush3.bf16.msra.mxu0 %v1717_v63 }
 0x770   :  { %1336 = vmatprep.subr.bf16.mxu0 %v1483_v20 }
 0x773   :  { %1338 = vmatpush3.bf16.msra.mxu0 %v1727_v2 }
 0x774   :  { %1339 = vmatprep.subr.bf16.mxu0 %v1483_v20 }
 0x777   :  { %1341 = vmatpush3.bf16.msra.mxu0 %v1737_v7 }
 0x778   :  { %1342 = vmatprep.subr.bf16.mxu0 %v1483_v20 }
 0x77b   :  { %1344 = vmatpush3.bf16.msra.mxu0 %v1747_v10 }
 0x77c   :  { %1345 = vmatprep.subr.bf16.mxu0 %v1483_v20 }
 0x77f   :  { %1347 = vmatpush3.bf16.msra.mxu0 %v1757_v13  ;;  %v1051_v13 = vld [vmem:[%s1979_s0] sm:$0xff]  ;;  %s1486_s0 = smov [#allocation3]  }
 0x780   :  { %1348 = vmatprep.subr.bf16.mxu0 %v1483_v20  ;;  %v842_v20 = vld [vmem:[%s1982_s3 + $0x2] sm:$0x1]  ;;  %v1056_v29 = vrot.slane %v1051_v13, 7  ;;  %s1100_s3 = sshll.u32 %s1486_s0, 4  ;;  %s1101_s3 = int_to_ptr.vmem [resolvable:$true] %s1100_s3 }
 0x781   :  { %s1454_s17 = scalar_lea.vmem %s1101_s3, 512  ;;  %p1459_p1 = scmp.lt.s32.totalorder %s1101_s3, %s1101_s3 }
 0x782   :  { %v1058_v42 = vsel %vm1055_vm11, %v1056_v29, %v1057_v31  ;;  %p1455_p0 = scmp.ne.s32.totalorder %s1101_s3, %s1454_s17  ;;  %p1460_p2 = scmp.lt.s32.totalorder %s1454_s17, %s1454_s17 }
 0x783   :  { %1350 = vmatpush3.bf16.msra.mxu0 %v1767_v16 }
 0x784   :  { %p1461_p3 = por %p1460_p2, %p1459_p1 }
 0x786   :  { %p1462_p4 = pnand %p1461_p3, %p1455_p0 }
 0x839   :  { %v943_v4 = vpop.f32.mrb[12].mxu0 }
 0x83a   :  { %1289 = vmatmul.mubr.f32.vlgmr.msra.gmra.mrb[14].mxu0 %v943_v4  ;;  %v1255_v55 = vpop.f32.mrb[13].mxu0 }
 0x90d   :  { %v1013_v56 = vpop.f32.mrb[14].mxu0 }
 0x90e   :  { %v1017_v60 = vmul.f32 %v1013_v56, %v1013_v56  ;;  %v1290_v63 = vpop.f32.mrb[15].mxu0 }
 0x910   :  { %1019 = vrot.lane.b32.xlu0 %v1017_v60, %s1484_s12 }
 0x982   :  { %v1020_v2 = vpop.permute.xlu0 %1019 }
 0x983   :  { %v1022_v7 = vsub.f32 %v1013_v56, %v1020_v2 }
 0x985   :  { %v1023_v15 = vmax.f32 %v1022_v7, 0.0 }
 0x987   :  { %v1024_v10 = vadd.f32 1e-05, %v1023_v15 }
 0x989   :  { %1452 = vrsqrt.f32 %v1024_v10 }
 0x993   :  { %v1453_v17 = vpop.eup %1452 }
 0x994   :  { %1027 = vrot.lane.b32.xlu1 %v1453_v17, %s1484_s12 }
 0xa06   :  { %v1028_v16 = vpop.permute.xlu1 %1027 }
 0xa07   :  { %v1030_v24 = vmul.f32 %v1028_v16, %v842_v20 }
 0xa09   :  { %v1031_v26 = vmul.f32 %v1030_v24, %v1013_v56  ;;  %v1036_v27 = vrot.slane %v1030_v24, %v1777_v36 }
 0xa0b   :  { %v1032_v34 = vsub.f32 %v843_v25, %v1031_v26  ;;  %v1037_v37 = vmul.f32 %v1036_v27, %v1880_v41  ;;  %v1038_v38 = vmul.f32 %v1036_v27, %v1882_v43  ;;  %v1039_v6 = vmul.f32 %v1036_v27, %v1889_v48 }
 0xa0c   :  { %v1040_v39 = vmul.f32 %v1036_v27, %v1891_v50  ;;  %v1041_v45 = vmul.f32 %v1036_v27, %v1898_v57 }
 0xa0d   :  { %v1045_v40 = vrot.slane %v1032_v34, %v1777_v36 }
 0xa0f   :  { %v1046_v46 = vadd.f32 %v1045_v40, %v1037_v37  ;;  %v1047_v47 = vadd.f32 %v1045_v40, %v1038_v38  ;;  %v1048_v49 = vadd.f32 %v1045_v40, %v1039_v6  ;;  %v1049_v51 = vadd.f32 %v1045_v40, %v1040_v39 }
 0xa10   :  { %v1050_v52 = vadd.f32 %v1045_v40, %v1041_v45 }
 0xa11   :  { %v1062_v41 = vadd.f32 %v1056_v29, %v1046_v46  ;;  %v1063_v53 = vadd.f32 %v1058_v42, %v1047_v47  ;;  %v1064_v43 = vadd.f32 %v1057_v31, %v1048_v49  ;;  %v1084_v54 = vadd.f32 %v1078_v32, %v1048_v49 }
 0xa12   :  { %v1085_v36 = vadd.f32 %v1080_v44, %v1049_v51  ;;  %v1086_v48 = vadd.f32 %v1079_v33, %v1050_v52 }
 0xa13   :  { %v1065_v50 = vmax.f32 %v1062_v41, 0.0  ;;  %v1066_v58 = vmax.f32 %v1063_v53, 0.0  ;;  %v1067_v57 = vmax.f32 %v1064_v43, 0.0  ;;  %v1087_v59 = vmax.f32 %v1084_v54, 0.0 }
 0xa14   :  { %v1088_v23 = vmax.f32 %v1085_v36, 0.0  ;;  %v1089_v61 = vmax.f32 %v1086_v48, 0.0 }
 0xa15   :  { %1069 = vst.msk [vmem:[#allocation3 - $0x1] sm:$0xfe] %vm1068_vm13, %v1065_v50 }
 0xa16   :  { %1070 = vst.msk [vmem:[#allocation3 + $0x7] sm:$0xff] %vm362_vm7, %v1066_v58  ;;  %1092 = vst.msk [vmem:[#allocation3 + $0x15] sm:$0xff] %vm362_vm7, %v1088_v23 }
 0xa17   :  { %1072 = vst.msk [vmem:[#allocation3 + $0xf] sm:$0x1] %vm1071_vm14, %v1067_v57 }
 0xa18   :  { %1091 = vst.msk [vmem:[#allocation3 + $0xd] sm:$0xf8] %vm1090_vm15, %v1087_v59 }
 0xa19   :  { %1094 = vst.msk [vmem:[#allocation3 + $0x1d] sm:$0x7] %vm1093_vm0, %v1089_v61 }
 0xa1a   :  { %1465 = shalt.err (!%p1462_p4)
}
 0xa1b   :  { %s1466_s20 = scalar_lea.hbm %s1985_s6, 512 }
 0xa1c   :  { %p1467_p5 = scmp.ne.s32.totalorder %s1985_s6, %s1466_s20  ;;  %p1470_p6 = scmp.lt.u32.totalorder %s1466_s20, %s1985_s6 }
 0xa1e   :  { %p1472_p7 = pnand %p1470_p6, %p1467_p5 }
 0xa20   :  { %1475 = shalt.err (!%p1472_p7)
}
 0xa21   :  { %s1487_s5 = smov 128   ;;  %s1488_s24 = smov 8  }
 0xa22   :  { %1106 = dma.vmem_to_hbm [thread:$0]  %s1101_s3, 512, %s1985_s6, [#allocation4], %s1487_s5, %s1487_s5, %s1488_s24  }
 0xa23   :  { %1476 = dma.done.wait [#allocation4], 512  }
 0xa24   :  { %1477 = vsyncadd [#allocation4], 4294966784 }
 0xa25   :  { %1110 = vsyncpa [#allocation4], 1 }

</bundles_post_ra>
